<compile_context>
chip_gen: v7x
topology: tpu7x:2x2x1
jax: 0.10.0
libtpu: 0.0.40
codegen_flags: <defaults>
</compile_context>

<pallas_src>
import jax
import jax.numpy as jnp
from jax.experimental import pallas as pl
from jax.experimental.pallas import tpu as pltpu


def _att_scores_kernel(x_ref, m_ref, out_ref):
    # x_ref  : (bb, N, C)  block of batch elements, native input dtype
    # m_ref  : (C, C)      fused weight M = scale * Wq^T @ Wk (f32)
    # out_ref: (bb, N)     scores for this batch block (f32)
    x = x_ref[...]                                        # native dtype

    # Key-side reduction first: sum tokens (sublane reduce), accumulate in f32.
    xsum = jnp.sum(x.astype(jnp.float32), axis=1)         # (bb, C)

    # v[b, i] = sum_j M[i, j] * xsum[b, j]   ==   xsum @ M^T  (tiny MXU matmul)
    v = jax.lax.dot_general(
        xsum, m_ref[...],
        dimension_numbers=(((1,), (1,)), ((), ())),
        preferred_element_type=jnp.float32)               # (bb, C)

    # scores[b, n] = sum_i x[b, n, i] * v[b, i]  -- VPU multiply + lane reduce.
    scores = jnp.sum(x.astype(jnp.float32) * v[:, None, :], axis=-1)  # (bb, N)
    out_ref[...] = scores.astype(out_ref.dtype)


def _tpu_vmem_bytes():
    """Physical VMEM per core, with a conservative fallback (v7x = 64 MiB)."""
    try:
        info = pltpu.get_tpu_info()
        v = getattr(info, "vmem_capacity_bytes", None)
        if v:
            return int(v)
    except Exception:
        pass
    return 64 << 20


def _pick_batch_block(B, N, C, x_itemsize, budget_bytes):
    """Largest batch-block size bb that (a) divides B, (b) satisfies the
    (8,128) rule for the (bb, N) output block (bb % 8 == 0 or bb == B), and
    (c) fits the VMEM budget including everything the kernel allocates."""

    def footprint(d):
        x_blk = 2 * d * N * C * x_itemsize      # double-buffered x input block
        x_f32 = d * N * C * 4                   # in-kernel f32 cast / temporaries
        out_blk = 2 * d * N * 4                 # double-buffered output block
        m_blk = 2 * C * C * 4                   # fused weight (double-buffered)
        small = 2 * d * C * 4 + d * N * 4       # xsum, v, scores
        return x_blk + x_f32 + out_blk + m_blk + small

    cands = [d for d in range(1, B + 1)
             if B % d == 0 and (d % 8 == 0 or d == B)]
    fitting = [d for d in cands if footprint(d) <= budget_bytes]
    if not fitting:
        return min(cands)                       # best effort for huge shapes
    bb = max(fitting)
    # Prefer >= 2 grid steps (v7x megacore sharding + pipeline overlap) when the
    # resulting tile is still large enough (>= 2 MiB) to amortize step overhead.
    if bb == B:
        smaller = [d for d in fitting
                   if d < B and d * N * C * x_itemsize >= (1 << 21)]
        if smaller:
            bb = max(smaller)
    return bb


def att_scores(x, qkv_weight, num_heads=8, qk_scale=None):
    """x: (B, N, C); qkv_weight: (2C, C) as in nn.Linear(dim, 2*dim, bias=False)."""
    B, N, C = x.shape
    hd = C // num_heads
    scale = qk_scale if qk_scale is not None else hd ** (-0.5)

    # nn.Linear computes X @ W^T; rows [0:C) of qkv_weight are q, [C:2C) are k.
    wq = qkv_weight[:C].astype(jnp.float32)        # (C, C)  out x in
    wk = qkv_weight[C:2 * C].astype(jnp.float32)   # (C, C)
    # Fused weight, scale folded in (done once in plain JAX from the weights).
    m = scale * (wq.T @ wk)                        # (C, C) f32

    # VMEM sizing: raise the scoped limit (v5e/v6e default is 16/32 MiB) but
    # stay well under physical capacity (64 MiB on v7x).
    vmem_cap = _tpu_vmem_bytes()
    vmem_limit = min((vmem_cap * 3) // 4, 96 << 20)
    budget = (vmem_limit * 6) // 10
    bb = _pick_batch_block(B, N, C, jnp.dtype(x.dtype).itemsize, budget)

    out = pl.pallas_call(
        _att_scores_kernel,
        out_shape=jax.ShapeDtypeStruct((B, N), jnp.float32),
        grid_spec=pltpu.PrefetchScalarGridSpec(
            num_scalar_prefetch=0,
            grid=(B // bb,),
            in_specs=[
                # x streamed in its native dtype (no wrapper f32 cast pass).
                pl.BlockSpec((bb, N, C), lambda b: (b, 0, 0)),
                # Constant index_map -> M is not re-fetched between steps.
                pl.BlockSpec((C, C), lambda b: (0, 0)),
            ],
            out_specs=pl.BlockSpec((bb, N), lambda b: (b, 0)),
        ),
        compiler_params=pltpu.CompilerParams(
            dimension_semantics=("parallel",),
            vmem_limit_bytes=int(vmem_limit),
        ),
    )(x, m)

    return out  # (B, N) f32


def att_scores_ref(x, qkv_weight, num_heads=8, qk_scale=None):
    """Pure-JAX reference mirroring the PyTorch forward exactly."""
    B, N, C = x.shape
    H = num_heads
    hd = C // H
    scale = qk_scale if qk_scale is not None else hd ** (-0.5)
    qkv = x @ qkv_weight.T                                      # (B, N, 2C)
    qkv = qkv.reshape(B, N, 2, H, hd).transpose(2, 0, 3, 1, 4)  # (2, B, H, N, hd)
    q, k = qkv[0], qkv[1]
    attn = jnp.einsum("bhnd,bhmd->bhnm", q, k) * scale          # (B, H, N, N)
    # attn_drop(p=0) is the identity.
    return attn.sum(axis=1).sum(axis=-1)                        # (B, N)


if __name__ == "__main__":
    # Small, module-consistent shapes: dim=32, num_heads=4 -> head_dim=8.
    B, N, C = 2, 8, 32
    num_heads = 4

    key = jax.random.PRNGKey(0)
    kx, kw = jax.random.split(key)
    x = jax.random.normal(kx, (B, N, C), dtype=jnp.float32)
    # Deterministic init mimicking nn.Linear default: U(-1/sqrt(C), 1/sqrt(C)).
    bound = 1.0 / (C ** 0.5)
    qkv_weight = jax.random.uniform(
        kw, (2 * C, C), dtype=jnp.float32, minval=-bound, maxval=bound)

    out = att_scores(x, qkv_weight, num_heads=num_heads)
    out = jax.block_until_ready(out)

    ref = att_scores_ref(x, qkv_weight, num_heads=num_heads)
    assert out.shape == (B, N)
    # Contraction reorder changes f32 accumulation order slightly -> 1e-3 tol.
    assert jnp.allclose(out, ref, atol=1e-3, rtol=1e-3), (
        f"mismatch: max abs err {jnp.max(jnp.abs(out - ref))}")

    print("KERNEL_OK")
</pallas_src>

<mosaic_0001>
module attributes {stable_mosaic.version = 11 : i64} {
  func.func @_att_scores_kernel(%arg0: i32, %arg1: memref<2x8x32xf32, #tpu.memory_space<vmem>>, %arg2: memref<32x32xf32, #tpu.memory_space<vmem>>, %arg3: memref<2x8xf32, #tpu.memory_space<vmem>>) attributes {dimension_semantics = [#tpu.dimension_semantics<parallel>], iteration_bounds = array<i64: 1>, scalar_prefetch = 0 : i64, scratch_operands = 0 : i64, tpu.core_type = #tpu.core_type<tc>, window_params = [{transform_indices = @transform_0, window_bounds = array<i64: 2, 8, 32>}, {pipeline_mode = #tpu.pipeline_mode<synchronous>, transform_indices = @transform_1, window_bounds = array<i64: 32, 32>}, {transform_indices = @transform_2, window_bounds = array<i64: 2, 8>}]} {
    %c0 = arith.constant 0 : index
    %c0_0 = arith.constant 0 : index
    %c0_1 = arith.constant 0 : index
    %0 = vector.load %arg1[%c0, %c0_0, %c0_1] : memref<2x8x32xf32, #tpu.memory_space<vmem>>, vector<2x8x32xf32>
    %cst = arith.constant dense<0.000000e+00> : vector<2x32xf32>
    %1 = vector.multi_reduction <add>, %0, %cst [1] : vector<2x8x32xf32> to vector<2x32xf32>
    %c0_2 = arith.constant 0 : index
    %c0_3 = arith.constant 0 : index
    %2 = vector.load %arg2[%c0_2, %c0_3] : memref<32x32xf32, #tpu.memory_space<vmem>>, vector<32x32xf32>
    %cst_4 = arith.constant dense<0.000000e+00> : vector<2x32xf32>
    %3 = tpu.matmul %1, %2, %cst_4 {dimension_numbers = #tpu.dot_dimension_numbers<[1], [1], [0], [0], [0, 0, 1, 0], [], []>} : vector<2x32xf32>, vector<32x32xf32>, vector<2x32xf32> -> vector<2x32xf32>
    %4 = vector.shape_cast %3 : vector<2x32xf32> to vector<2x1x32xf32>
    %5 = vector.broadcast %4 : vector<2x1x32xf32> to vector<2x8x32xf32>
    %6 = arith.mulf %0, %5 : vector<2x8x32xf32>
    %cst_5 = arith.constant dense<0.000000e+00> : vector<2x8xf32>
    %7 = vector.multi_reduction <add>, %6, %cst_5 [2] : vector<2x8x32xf32> to vector<2x8xf32>
    %c0_6 = arith.constant 0 : index
    %c0_7 = arith.constant 0 : index
    %8 = vector.load %arg3[%c0_6, %c0_7] : memref<2x8xf32, #tpu.memory_space<vmem>>, vector<2x8xf32>
    tpu.vector_store %arg3[%c0_6, %c0_7], %7 {strides = array<i32>} : memref<2x8xf32, #tpu.memory_space<vmem>>, vector<2x8xf32>,
    return
  }
  func.func @transform_0(%arg0: i32) -> (i32, i32, i32) {
    %c0_i32 = arith.constant 0 : i32
    %c0_i32_0 = arith.constant 0 : i32
    %c0_i32_1 = arith.constant 0 : i32
    return %arg0, %c0_i32, %c0_i32_0 : i32, i32, i32
  }
  func.func @transform_1(%arg0: i32) -> (i32, i32) {
    %c0_i32 = arith.constant 0 : i32
    %c0_i32_0 = arith.constant 0 : i32
    %c0_i32_1 = arith.constant 0 : i32
    return %c0_i32, %c0_i32_0 : i32, i32
  }
  func.func @transform_2(%arg0: i32) -> (i32, i32) {
    %c0_i32 = arith.constant 0 : i32
    %c0_i32_0 = arith.constant 0 : i32
    return %arg0, %c0_i32 : i32, i32
  }
}

</mosaic_0001>

<bundles_post_ra>
// kernel: tpu_custom_call.1
= control target key start
LH: loop header
LB: loop body
LE: loop exit
PB: predicated region body
PF: predicated region fallthrough
CT: control target
= control target key end

     0   :  { %7 = vsyncpa [#allocation3], 0  ;;  %s409_s0 = inlined_call_operand.hbm [shape: f32[2,8,32], index: 0, kind: input, shape index: {}]   ;;  %s410_s1 = inlined_call_operand.hbm [shape: f32[32,32], index: 1, kind: input, shape index: {}]   ;;  %s411_s2 = inlined_call_operand.hbm [shape: f32[2,8], index: 2, kind: output, shape index: {}]  }
   0x1   :  { %8 = vsyncpa [#allocation6], 0 }
   0x2   :  { %9 = vsyncpa [#allocation4], 0  ;;  %s332_s9 = smov [#allocation2]   ;;  %s260_s13 = scalar_lea.hbm %s409_s0, 256 }
   0x3   :  { %s15_s10 = sshll.u32 %s332_s9, 4  ;;  %p261_p0 = scmp.ne.s32.totalorder %s409_s0, %s260_s13  ;;  %s16_s10 = int_to_ptr.vmem [resolvable:$true] %s15_s10 }
   0x4   :  { %p264_p1 = scmp.lt.u32.totalorder %s260_s13, %s409_s0 }
   0x6   :  { %p266_p2 = pnand %p264_p1, %p261_p0 }
   0x8   :  { %269 = shalt.err (!%p266_p2)
}
   0x9   :  { %s270_s18 = scalar_lea.vmem %s16_s10, 256  ;;  %p275_p4 = scmp.lt.s32.totalorder %s16_s10, %s16_s10 }
   0xa   :  { %p271_p3 = scmp.ne.s32.totalorder %s16_s10, %s270_s18  ;;  %p276_p5 = scmp.lt.s32.totalorder %s270_s18, %s270_s18 }
   0xc   :  { %p277_p6 = por %p276_p5, %p275_p4 }
   0xe   :  { %p278_p7 = pnand %p277_p6, %p271_p3 }
  0x10   :  { %281 = shalt.err (!%p278_p7)
}
  0x11   :  { %s333_s19 = smov 128   ;;  %s334_s20 = smov 8  }
  0x12   :  { %21 = dma.hbm_to_vmem [thread:$0]  %s409_s0, 256, %s16_s10, [#allocation3], %s333_s19, %s333_s19, %s334_s20  }
  0x13   :  { %s335_s23 = smov [#allocation5]   ;;  %s282_s27 = scalar_lea.hbm %s410_s1, 512 }
  0x14   :  { %s27_s24 = sshll.u32 %s335_s23, 4  ;;  %p283_p8 = scmp.ne.s32.totalorder %s410_s1, %s282_s27  ;;  %s28_s24 = int_to_ptr.vmem [resolvable:$true] %s27_s24 }
  0x15   :  { %p286_p9 = scmp.lt.u32.totalorder %s282_s27, %s410_s1 }
  0x17   :  { %p288_p10 = pnand %p286_p9, %p283_p8 }
  0x19   :  { %291 = shalt.err (!%p288_p10)
}
  0x1a   :  { %s292_s4 = scalar_lea.vmem %s28_s24, 512  ;;  %p297_p12 = scmp.lt.s32.totalorder %s28_s24, %s28_s24 }
  0x1b   :  { %p293_p11 = scmp.ne.s32.totalorder %s28_s24, %s292_s4  ;;  %p298_p13 = scmp.lt.s32.totalorder %s292_s4, %s292_s4 }
  0x1d   :  { %p299_p0 = por %p298_p13, %p297_p12 }
  0x1f   :  { %p300_p1 = pnand %p299_p0, %p293_p11 }
  0x21   :  { %303 = shalt.err (!%p300_p1)
}
  0x22   :  { %33 = dma.hbm_to_vmem [thread:$0]  %s410_s1, 512, %s28_s24, [#allocation6], %s333_s19, %s333_s19, %s334_s20  }
  0x23   :  { %326 = dma.done.wait [#allocation3], 256  }
  0x24   :  { %327 = vsyncadd [#allocation3], 4294967040 }
  0x25   :  { %328 = dma.done.wait [#allocation6], 512  }
  0x26   :  { %329 = vsyncadd [#allocation6], 4294966784  ;;  %v336_v0 = vmov 0.0|0.0   ;;  %vm337_vm0 = vmmov 0   ;;  %v338_v1 = vmov 0.0   ;;  %vm42_vm1 = vcmask 261120  }
  0x27   :  { %243 = vmatprep.subr.bf16.mxu0 %v336_v0  ;;  %240 = vmatprep.mubr.msk.f32.mxu0 %vm337_vm0, %v338_v1  ;;  %v57_v2 = vld [vmem:[#allocation5] sm:$0xff]  ;;  %v58_v3 = vld [vmem:[#allocation5 + $0x8] sm:$0xff]  ;;  %vm382_vm2 = vmpackc.low %vm42_vm1, %vm42_vm1  ;;  %vm63_vm3 = vcmask 1041409   ;;  %v153_v26 = vlaneseq  ;;  %v339_v30 = vmov 1966171168   ;;  %s340_s1 = smov [#allocation7]  }
  0x28   :  { %v244_v5 = vpack.c.bf16 %v58_v3, %v57_v2  ;;  %v40_v6 = vld [vmem:[#allocation2] sm:$0xff]  ;;  %v41_v7 = vld [vmem:[#allocation2 + $0x8] sm:$0xff]  ;;  %v151_v31 = vunpack.c.l.s4 %v339_v30  ;;  %s212_s6 = sshll.u32 %s340_s1, 4  ;;  %vm204_vm4 = vcmask 58368   ;;  %s213_s6 = int_to_ptr.vmem [resolvable:$true] %s212_s6 }
  0x29   :  { %v43_v8 = vsel %vm42_vm1, %v40_v6, 0.0  ;;  %v50_v9 = vsel %vm42_vm1, %v41_v7, 0.0  ;;  %v59_v12 = vld [vmem:[#allocation5 + $0x10] sm:$0xff]  ;;  %v60_v13 = vld [vmem:[#allocation5 + $0x18] sm:$0xff]  ;;  %v154_v27 = vshrl.u32 %v153_v26, 7  ;;  %v193_v28 = vand.u32 127, %v153_v26  ;;  %p309_p3 = scmp.lt.s32.totalorder %s213_s6, %s213_s6 }
  0x2a   :  { %246 = vmatpush3.bf16.xpose.msk.msra.mxu0 %vm382_vm2, %v244_v5  ;;  %v44_v10 = vrot.slane %v43_v8, 4  ;;  %v51_v11 = vrot.slane %v50_v9, 4  ;;  %v248_v16 = vpack.c.bf16 %v60_v13, %v59_v12  ;;  %v152_v32 = vunpack.c.0.s8 %v151_v31  ;;  %s304_s7 = scalar_lea.vmem %s213_s6, 32 }
  0x2b   :  { %247 = vmatprep.subr.bf16.mxu0 %v336_v0  ;;  %v196_v29 = vsub.s32 %v193_v28, %v154_v27  ;;  %v174_v37 = vsub.s32 0, %v154_v27  ;;  %p305_p2 = scmp.ne.s32.totalorder %s213_s6, %s304_s7  ;;  %p310_p4 = scmp.lt.s32.totalorder %s304_s7, %s304_s7 }
  0x2c   :  { %v45_v14 = vadd.f32 %v44_v10, %v43_v8  ;;  %v52_v15 = vadd.f32 %v51_v11, %v50_v9  ;;  %v155_v33 = vsub.s32 %v152_v32, %v154_v27 }
  0x2d   :  { %p311_p5 = por %p310_p4, %p309_p3 }
  0x2e   :  { %v46_v17 = vrot.slane %v45_v14, 2  ;;  %v53_v18 = vrot.slane %v52_v15, 2 }
  0x2f   :  { %p312_p6 = pnand %p311_p5, %p305_p2 }
  0x30   :  { %v47_v19 = vadd.f32 %v46_v17, %v45_v14  ;;  %v54_v20 = vadd.f32 %v53_v18, %v52_v15 }
  0x32   :  { %250 = vmatpush3.bf16.xpose.msk.msra.mxu0 %vm382_vm2, %v248_v16  ;;  %v48_v21 = vrot.slane %v47_v19, 1  ;;  %v55_v22 = vrot.slane %v54_v20, 1 }
  0x34   :  { %v49_v23 = vadd.f32 %v48_v21, %v47_v19  ;;  %v56_v24 = vadd.f32 %v55_v22, %v54_v20 }
  0x36   :  { %v64_v25 = vsel %vm63_vm3, %v56_v24, %v49_v23 }
  0x39   :  { %241 = vmatmul.mubr.msk.f32.vlgmr.msra.gmra.mrb[0].mxu0 %vm42_vm1, %v64_v25 }
 0x10c   :  { %v145_v34 = vpop.f32.mrb[0].mxu0 }
 0x10d   :  { %v156_v35 = vrot.slane %v145_v34, %v155_v33  ;;  %v242_v36 = vpop.f32.mrb[1].mxu0 }
 0x10f   :  { %v157_v38 = vcombine.high %v156_v35, %v156_v35  ;;  %v164_v39 = vrot.slane %v156_v35, %v155_v33 }
 0x111   :  { %v171_v40 = vrot.slane %v157_v38, %v155_v33  ;;  %v175_v41 = vrot.slane %v164_v39, %v174_v37 }
 0x113   :  { %v182_v42 = vmul.f32 %v175_v41, %v40_v6  ;;  %v179_v43 = vrot.slane %v171_v40, %v174_v37 }
 0x115   :  { %v184_v44 = vsel %vm42_vm1, %v182_v42, 0.0  ;;  %v183_v45 = vmul.f32 %v179_v43, %v41_v7 }
 0x116   :  { %185 = vadd.xlane.f32.xlu0 %v184_v44 }
 0x117   :  { %v187_v46 = vsel %vm42_vm1, %v183_v45, 0.0 }
 0x11a   :  { %188 = vadd.xlane.f32.xlu0 %v187_v46 }
 0x1a3   :  { %v186_v47 = vpop.xlane.xlu0 %185 }
 0x1a4   :  { %v197_v49 = vrot.slane %v186_v47, %v196_v29 }
 0x1a7   :  { %v189_v48 = vpop.xlane.xlu0 %188 }
 0x1a8   :  { %v201_v50 = vrot.slane %v189_v48, %v196_v29 }
 0x1aa   :  { %v202_v51 = vsel %vm63_vm3, %v201_v50, %v197_v49 }
 0x1ab   :  { %205 = vst.msk [vmem:[#allocation7] sm:$0x3] %vm204_vm4, %v202_v51 }
 0x1ac   :  { %315 = shalt.err (!%p312_p6)
}
 0x1ad   :  { %s316_s10 = scalar_lea.hbm %s411_s2, 32 }
 0x1ae   :  { %p317_p7 = scmp.ne.s32.totalorder %s411_s2, %s316_s10  ;;  %p320_p8 = scmp.lt.u32.totalorder %s316_s10, %s411_s2 }
 0x1b0   :  { %p322_p9 = pnand %p320_p8, %p317_p7 }
 0x1b2   :  { %325 = shalt.err (!%p322_p9)
}
 0x1b3   :  { %215 = dma.vmem_to_hbm [thread:$0]  %s213_s6, 32, %s411_s2, [#allocation4]  }
 0x1b4   :  { %330 = dma.done.wait [#allocation4], 32  }
 0x1b5   :  { %331 = vsyncadd [#allocation4], 4294967264 }
 0x1b6   :  { %219 = vsyncpa [#allocation3], 1 }
 0x1b7   :  { %220 = vsyncpa [#allocation6], 1 }
 0x1b8   :  { %221 = vsyncpa [#allocation4], 1 }

</bundles_post_ra>
